<compile_context>
chip_gen: v6e
topology: v6e:2x2x1
jax: 0.10.0
libtpu: 0.0.40
codegen_flags: <defaults>
</compile_context>

<pallas_src>
import functools

import jax
import jax.numpy as jnp
from jax.experimental import pallas as pl
from jax.experimental.pallas import tpu as pltpu


def _round_up(x, m):
    return (x + m - 1) // m * m


def _patch_proj_kernel(patches_ref, w_ref, pos_ref, out_ref, *, tm, n_pos_tiles):
    # patches_ref: (TM, Kp)  compute dtype (bf16 by default)
    # w_ref:       (Kp, Ep)  compute dtype (constant block, DMA'd once)
    # pos_ref:     (Pp, Ep)  f32, bias already folded in (resident block)
    # out_ref:     (TM, Ep)  out dtype
    acc = jnp.dot(patches_ref[...], w_ref[...],
                  preferred_element_type=jnp.float32)          # MXU, f32 acc
    if n_pos_tiles == 1:
        pos = pos_ref[...]
    else:
        start = pl.multiple_of((pl.program_id(0) % n_pos_tiles) * tm, tm)
        pos = pos_ref[pl.ds(start, tm), :]
    out_ref[...] = (acc + pos).astype(out_ref.dtype)


@functools.partial(jax.jit,
                   static_argnames=("patch_size", "compute_dtype", "out_dtype"))
def patch_embedding(x, conv_w, conv_b, cls_token, positions, *, patch_size,
                    compute_dtype=jnp.bfloat16, out_dtype=jnp.bfloat16):
    """x: (B, C, H, W) float32 (NCHW, like PyTorch). Returns (B, P+1, E)."""
    B, C, H, W = x.shape
    E = conv_w.shape[0]
    p = patch_size
    hp, wp = H // p, W // p
    P = hp * wp
    K = C * p * p

    # Pad to MXU / lane friendly shapes.
    Kp = _round_up(K, 128)
    Ep = _round_up(E, 128)
    Pp = _round_up(P, 8)

    # Tile: largest multiple-of-8 divisor of Pp (<= 256) -> no per-tile padding
    # waste and pos tiles stay batch-aligned. Shrink if the grid would collapse
    # to one step (v7x megacore needs >= 2 parallel steps).
    divs = [d for d in range(8, min(256, Pp) + 1, 8) if Pp % d == 0]
    TM = divs[-1]
    if B * (Pp // TM) < 2:
        for d in reversed(divs):
            if B * (Pp // d) >= 2:
                TM = d
                break
    nP = Pp // TM
    M = B * Pp

    # Patch extraction; per-patch flattening order (c, ph, pw) matches the
    # Conv2d weight layout (E, C, ph, pw).
    patches = x.reshape(B, C, hp, p, wp, p)
    patches = patches.transpose(0, 2, 4, 1, 3, 5).reshape(B, P, K)
    patches = jnp.pad(patches, ((0, 0), (0, Pp - P), (0, Kp - K)))
    patches = patches.astype(compute_dtype).reshape(M, Kp)

    w_mat = conv_w.reshape(E, K).T                              # (K, E)
    w_mat = jnp.pad(w_mat, ((0, Kp - K), (0, Ep - E))).astype(compute_dtype)

    pos = positions.reshape(P + 1, E).astype(jnp.float32)
    pos_patch = pos[1:] + conv_b.reshape(1, E).astype(jnp.float32)  # fold bias
    pos_patch = jnp.pad(pos_patch, ((0, Pp - P), (0, Ep - E)))      # (Pp, Ep) f32

    isz = jnp.dtype(compute_dtype).itemsize
    osz = jnp.dtype(out_dtype).itemsize
    flops = 2 * M * Kp * Ep
    bytes_accessed = (M * Kp * isz        # patches in (once)
                      + Kp * Ep * isz     # weight in (once, constant block)
                      + Pp * Ep * 4       # pos+bias in (once, resident block)
                      + M * Ep * osz)     # out

    kernel = functools.partial(_patch_proj_kernel, tm=TM, n_pos_tiles=nP)

    patch_out = pl.pallas_call(
        kernel,
        out_shape=jax.ShapeDtypeStruct((M, Ep), out_dtype),
        grid_spec=pltpu.PrefetchScalarGridSpec(
            num_scalar_prefetch=0,
            grid=(M // TM,),
            in_specs=[
                pl.BlockSpec((TM, Kp), lambda i: (i, 0)),
                pl.BlockSpec((Kp, Ep), lambda i: (0, 0)),   # constant -> 1 DMA
                pl.BlockSpec((Pp, Ep), lambda i: (0, 0)),   # resident pos+bias
            ],
            out_specs=pl.BlockSpec((TM, Ep), lambda i: (i, 0)),
        ),
        compiler_params=pltpu.CompilerParams(
            dimension_semantics=("parallel",),
            vmem_limit_bytes=48 * 1024 * 1024,
            # Let XLA fuse the patch transpose/pad/cast producer into the
            # pallas_call input instead of materializing it in HBM.
            allow_input_fusion=[True, False, False],
        ),
        cost_estimate=pl.CostEstimate(
            flops=flops, transcendentals=0, bytes_accessed=bytes_accessed),
    )(patches, w_mat, pos_patch)

    patch_out = patch_out.reshape(B, Pp, Ep)[:, :P, :E]         # drop padding

    # cls row (batch-invariant, tiny) handled outside the kernel.
    cls_row = cls_token.reshape(1, 1, E).astype(jnp.float32) + pos[0].reshape(1, 1, E)
    cls_rows = jnp.broadcast_to(cls_row, (B, 1, E)).astype(out_dtype)
    return jnp.concatenate([cls_rows, patch_out], axis=1)       # (B, P+1, E)


def _reference(x, conv_w, conv_b, cls_token, positions, patch_size,
               compute_dtype=jnp.float32):
    # Pure-JAX reference mirroring the PyTorch forward (Conv2d stride=kernel).
    B, C, H, W = x.shape
    E = conv_w.shape[0]
    p = patch_size
    hp, wp = H // p, W // p
    P = hp * wp
    K = C * p * p
    patches = x.reshape(B, C, hp, p, wp, p).transpose(0, 2, 4, 1, 3, 5)
    patches = patches.reshape(B, P, K).astype(compute_dtype)
    w = conv_w.reshape(E, K).T.astype(compute_dtype)
    proj = jnp.dot(patches, w, preferred_element_type=jnp.float32) + conv_b
    cls = jnp.broadcast_to(cls_token.reshape(1, 1, E), (B, 1, E))
    out = jnp.concatenate([cls, proj], axis=1)                  # (B, P+1, E)
    return out + positions.reshape(1, P + 1, E)


if __name__ == "__main__":
    # Small, deterministic config consistent with the module's forward:
    # in_channels=4, patch_size=4, embed_size=32, img_size=16 -> 16 patches.
    B, C, H, W = 2, 4, 16, 16
    patch_size = 4
    E = 32
    P = (H // patch_size) * (W // patch_size)

    key = jax.random.PRNGKey(0)
    kx, kw, kb, kc, kp = jax.random.split(key, 5)
    x = jax.random.normal(kx, (B, C, H, W), dtype=jnp.float32)
    conv_w = jax.random.normal(kw, (E, C, patch_size, patch_size),
                               dtype=jnp.float32) * 0.05
    conv_b = jax.random.normal(kb, (E,), dtype=jnp.float32) * 0.05
    cls_token = jax.random.normal(kc, (1, 1, E), dtype=jnp.float32)
    positions = jax.random.normal(kp, (P + 1, E), dtype=jnp.float32)

    ref_bf16 = _reference(x, conv_w, conv_b, cls_token, positions, patch_size,
                          compute_dtype=jnp.bfloat16)
    ref_f32 = _reference(x, conv_w, conv_b, cls_token, positions, patch_size)

    # f32 output path: tight check vs a reference with the same bf16 operand
    # quantization, loose check vs full-fp32 math.
    out_f32 = patch_embedding(x, conv_w, conv_b, cls_token, positions,
                              patch_size=patch_size,
                              compute_dtype=jnp.bfloat16, out_dtype=jnp.float32)
    out_f32 = jax.block_until_ready(out_f32)
    assert out_f32.shape == (B, P + 1, E), out_f32.shape
    assert jnp.allclose(out_f32, ref_bf16, atol=1e-3, rtol=1e-3), \
        "f32-out mismatch vs bf16-quantized reference"
    assert jnp.allclose(out_f32, ref_f32, atol=5e-2, rtol=5e-2), \
        "f32-out mismatch vs fp32 reference"

    # Default (bf16 output) path: adds ~1e-3 relative output quantization.
    out_bf16 = patch_embedding(x, conv_w, conv_b, cls_token, positions,
                               patch_size=patch_size)
    out_bf16 = jax.block_until_ready(out_bf16)
    assert out_bf16.shape == (B, P + 1, E), out_bf16.shape
    assert out_bf16.dtype == jnp.bfloat16, out_bf16.dtype
    assert jnp.allclose(out_bf16.astype(jnp.float32), ref_f32,
                        atol=6e-2, rtol=6e-2), \
        "bf16-out mismatch vs fp32 reference"

    print("KERNEL_OK")
</pallas_src>

<mosaic_0001>
module attributes {stable_mosaic.version = 11 : i64} {
  func.func @_patch_proj_kernel(%arg0: i32, %arg1: memref<16x128xbf16, #tpu.memory_space<vmem>>, %arg2: memref<128x128xbf16, #tpu.memory_space<vmem>>, %arg3: memref<16x128xf32, #tpu.memory_space<vmem>>, %arg4: memref<16x128xf32, #tpu.memory_space<vmem>>) attributes {dimension_semantics = [#tpu.dimension_semantics<parallel>], iteration_bounds = array<i64: 2>, scalar_prefetch = 0 : i64, scratch_operands = 0 : i64, tpu.core_type = #tpu.core_type<tc>, window_params = [{transform_indices = @transform_0, window_bounds = array<i64: 16, 128>}, {pipeline_mode = #tpu.pipeline_mode<synchronous>, transform_indices = @transform_1, window_bounds = array<i64: 128, 128>}, {pipeline_mode = #tpu.pipeline_mode<synchronous>, transform_indices = @transform_2, window_bounds = array<i64: 16, 128>}, {transform_indices = @transform_3, window_bounds = array<i64: 16, 128>}]} {
    %c0 = arith.constant 0 : index
    %c0_0 = arith.constant 0 : index
    %0 = vector.load %arg1[%c0, %c0_0] : memref<16x128xbf16, #tpu.memory_space<vmem>>, vector<16x128xbf16>
    %c0_1 = arith.constant 0 : index
    %c0_2 = arith.constant 0 : index
    %1 = vector.load %arg2[%c0_1, %c0_2] : memref<128x128xbf16, #tpu.memory_space<vmem>>, vector<128x128xbf16>
    %cst = arith.constant dense<0.000000e+00> : vector<16x128xf32>
    %2 = tpu.matmul %0, %1, %cst {dimension_numbers = #tpu.dot_dimension_numbers<[1], [0], [0], [1], [0, 0, 1, 1], [], []>} : vector<16x128xbf16>, vector<128x128xbf16>, vector<16x128xf32> -> vector<16x128xf32>
    %c0_3 = arith.constant 0 : index
    %c0_4 = arith.constant 0 : index
    %3 = vector.load %arg3[%c0_3, %c0_4] : memref<16x128xf32, #tpu.memory_space<vmem>>, vector<16x128xf32>
    %4 = arith.addf %2, %3 : vector<16x128xf32>
    %c0_5 = arith.constant 0 : index
    %c0_6 = arith.constant 0 : index
    %5 = vector.load %arg4[%c0_5, %c0_6] : memref<16x128xf32, #tpu.memory_space<vmem>>, vector<16x128xf32>
    tpu.vector_store %arg4[%c0_5, %c0_6], %4 {strides = array<i32>} : memref<16x128xf32, #tpu.memory_space<vmem>>, vector<16x128xf32>,
    return
  }
  func.func @transform_0(%arg0: i32) -> (i32, i32) {
    %c0_i32 = arith.constant 0 : i32
    %c0_i32_0 = arith.constant 0 : i32
    return %arg0, %c0_i32 : i32, i32
  }
  func.func @transform_1(%arg0: i32) -> (i32, i32) {
    %c0_i32 = arith.constant 0 : i32
    %c0_i32_0 = arith.constant 0 : i32
    %c0_i32_1 = arith.constant 0 : i32
    return %c0_i32, %c0_i32_0 : i32, i32
  }
  func.func @transform_2(%arg0: i32) -> (i32, i32) {
    %c0_i32 = arith.constant 0 : i32
    %c0_i32_0 = arith.constant 0 : i32
    %c0_i32_1 = arith.constant 0 : i32
    return %c0_i32, %c0_i32_0 : i32, i32
  }
  func.func @transform_3(%arg0: i32) -> (i32, i32) {
    %c0_i32 = arith.constant 0 : i32
    %c0_i32_0 = arith.constant 0 : i32
    return %arg0, %c0_i32 : i32, i32
  }
}

</mosaic_0001>

<bundles_post_ra>
// kernel: patch_embedding.1
= control target key start
LH: loop header
LB: loop body
LE: loop exit
PB: predicated region body
PF: predicated region fallthrough
CT: control target
= control target key end

     0   :  { %s446_s12 = smov 0   ;;  %s493_s0 = inlined_call_operand.vmem [shape: bf16[32,128], index: 0, kind: input, shape index: {}]   ;;  %s494_s1 = inlined_call_operand.vmem [shape: bf16[128,128], index: 1, kind: input, shape index: {}]   ;;  %s495_s2 = inlined_call_operand.vmem [shape: f32[16,128], index: 2, kind: input, shape index: {}]   ;;  %s496_s3 = inlined_call_operand.vmem [shape: f32[32,128], index: 3, kind: output, shape index: {}]  }
   0x1 LB: > { %s348_s13 = sadd.s32 4294967295, %s422_s12   ;;  %p352_p0 = scmp.ge.s32.totalorder %s422_s12, 1  ;;  %s422_s12 = sphi %s446_s12, %s13_s12  }
   0x2   : > { %p138_p1 = scmp.lt.s32.totalorder %s422_s12, 3 }
   0x4   : > { %p139_p2 = pnand %p352_p0, %p138_p1 }
   0x5   : > { %s353_s18 = sshll.u32 (!%p139_p2), %s348_s13, 1 }
   0x6   : > { %142 = sbr.rel (%p139_p2) target bundleno = 244 (0xf4), region = 32  ;;  %p163_p3 = scmp.lt.s32.totalorder (!%p139_p2), %s353_s18, 3 }
   0xb   : > { %v407_v0 = vld [vmem:[%s494_s1 + $0x38] sm:$0xff]   ;;  %v424_v1 = vmov 0.0   ;;  %v408_v2 = vld [vmem:[%s494_s1 + $0x30] sm:$0xff]   ;;  %vm425_vm0 = vmmov 0   ;;  %s498_s18 = smov (!%p163_p3, %s353_s18), 3  ;;  %v409_v3 = vld [vmem:[%s494_s1 + $0x28] sm:$0xff]  }
   0xc   : > { %377 = vmatprep.subr.bf16.mxu0 %v424_v1  ;;  %393 = vmatprep.mubr.msk.bf16.mxu0 %vm425_vm0, %v424_v1  ;;  %s354_s21 = sshll.u32 %s498_s18, 2  ;;  %v410_v4 = vld [vmem:[%s494_s1 + $0x20] sm:$0xff]   ;;  %v411_v5 = vld [vmem:[%s494_s1 + $0x18] sm:$0xff]   ;;  %v412_v6 = vld [vmem:[%s494_s1 + $0x10] sm:$0xff]   ;;  %s356_s8 = sshll.u32 %s498_s18, 3 }
   0xd   : > { %378 = vmatpush3.bf16.msra.mxu0 %v407_v0  ;;  %s166_s24 = scalar_lea.vmem %s493_s0, %s354_s21  ;;  %v413_v7 = vld [vmem:[%s494_s1 + $0x8] sm:$0xff]   ;;  %v414_v8 = vld [vmem:[%s494_s1] sm:$0xff]   ;;  %s172_s14 = scalar_lea.vmem %s496_s3, %s356_s8 }
   0xe   : > { %379 = vmatprep.subr.bf16.mxu0 %v424_v1  ;;  %v415_v9 = vld [vmem:[%s166_s24] sm:$0xff]   ;;  %v194_v14 = vld [vmem:[%s495_s2 + $0x8] sm:$0xff] }
   0xf   : > { %v193_v10 = vld [vmem:[%s495_s2] sm:$0xff] }
  0x11   : > { %380 = vmatpush3.bf16.msra.mxu0 %v408_v2 }
  0x12   : > { %381 = vmatprep.subr.bf16.mxu0 %v424_v1 }
  0x15   : > { %382 = vmatpush3.bf16.msra.mxu0 %v409_v3 }
  0x16   : > { %383 = vmatprep.subr.bf16.mxu0 %v424_v1 }
  0x19   : > { %384 = vmatpush3.bf16.msra.mxu0 %v410_v4 }
  0x1a   : > { %385 = vmatprep.subr.bf16.mxu0 %v424_v1 }
  0x1d   : > { %386 = vmatpush3.bf16.msra.mxu0 %v411_v5 }
  0x1e   : > { %387 = vmatprep.subr.bf16.mxu0 %v424_v1 }
  0x21   : > { %388 = vmatpush3.bf16.msra.mxu0 %v412_v6 }
  0x22   : > { %389 = vmatprep.subr.bf16.mxu0 %v424_v1 }
  0x25   : > { %390 = vmatpush3.bf16.msra.mxu0 %v413_v7 }
  0x26   : > { %391 = vmatprep.subr.bf16.mxu0 %v424_v1 }
  0x29   : > { %392 = vmatpush3.bf16.msra.mxu0 %v414_v8 }
  0x2c   : > { %394 = vmatmul.mubr.bf16.vlgmr.msra.gmra.mxu0 %v415_v9 }
  0xec   : > { %v283_v11 = vpop.f32.mrf.mxu0 }
  0xed   : > { %v284_v12 = vadd.f32 %v283_v11, %v193_v10 }
  0xee   : > { %v395_v13 = vpop.f32.mrf.mxu0 }
  0xef   : > { %290 = vst [vmem:[%s172_s14] sm:$0xff] %v284_v12 }
  0xf0   : > { %v286_v15 = vpop.f32.mrf.mxu0 }
  0xf1   : > { %v287_v16 = vadd.f32 %v286_v15, %v194_v14 }
  0xf2   : > { %v396_v17 = vpop.f32.mrf.mxu0 }
  0xf3   : > { %291 = vst [vmem:[%s172_s14 + $0x8] sm:$0xff] %v287_v16 }
  0xf4 PF: > { %s13_s12 = sadd.s32 1, %s422_s12  }
  0xf5   : > { %p10_p4 = scmp.ge.s32.totalorder %s13_s12, 4  }
  0xf7   :  { %12 = sbr.rel (!%p10_p4) target bundleno = 1 (0x1), region = 62 }

</bundles_post_ra>
